<compile_context>
chip_gen: v7x
topology: tpu7x:2x2x1
jax: 0.10.0
libtpu: 0.0.40
codegen_flags: <defaults>
</compile_context>

<pallas_src>
import functools

import jax
import jax.numpy as jnp
from jax.experimental import pallas as pl
from jax.experimental.pallas import tpu as pltpu


def _round_up(x, m):
    return ((x + m - 1) // m) * m


def _choose_batch_tile(batch, seq_pad, d, h, vmem_budget_bytes):
    """Pick the batch tile from a VMEM budget, accounting for (8,128) padding."""
    d_lane = _round_up(d, 128)
    h_lane = _round_up(h, 128)
    # f32 bytes live in VMEM per batch row:
    #   2x double-buffered x tile, the (S,H) tanh intermediate, the (S,D)
    #   weighted-x temporary, and the score/exp/weight vregs (lane-padded to 128).
    per_row = 4 * seq_pad * (2 * d_lane + h_lane + d_lane + 2 * 128)
    tb = (vmem_budget_bytes // per_row) // 8 * 8
    tb = max(8, tb)
    # Keep >= 2 grid steps for large batches so the ("parallel",) grid axis can
    # shard across both TensorCores on v7x megacore.
    tb = min(tb, max(8, _round_up((batch + 1) // 2, 8)))
    return tb


def _nn_attention_kernel(x_ref, w1_ref, b1_ref, w2_ref,
                         fw1_ref, fb1_ref, fw2_ref, fb2_ref, out_ref,
                         *, seq_len, matmul_dtype):
    # x_ref:   (TB, S_pad, D)  tile of batch rows (streamed from HBM)
    # w1_ref:  (D, H)  b1_ref: (1, H)          attention Linear(D -> H)
    # w2_ref:  (1, H)                           attention Linear(H -> 1) as a row
    # fw1_ref: (D, H)  fb1_ref: (1, H)          fc1
    # fw2_ref: (1, H)  fb2_ref: (1,) in SMEM    fc2
    # out_ref: (1, TB)  lane-dense output row
    tb, s_pad, d = x_ref.shape

    x = x_ref[...]                                         # (TB, S_pad, D) f32
    # Free reshape: s_pad is a multiple of 8, so sublane tiles are not split.
    xf = x.reshape(tb * s_pad, d)                          # (TB*S_pad, D)

    # --- attention scoring head: tanh(x @ W1 + b1) ---------------------------
    h = jnp.dot(xf.astype(matmul_dtype), w1_ref[...].astype(matmul_dtype),
                preferred_element_type=jnp.float32) + b1_ref[...]
    h = jnp.tanh(h)                                        # (TB*S_pad, H) f32 (EUP)
    h = h.reshape(tb, s_pad, -1)                           # (TB, S_pad, H), free

    # Linear(H -> 1) as VPU mul + lane reduce (skip an N=1 MXU pass).
    # NOTE: the scorer bias b2 is intentionally dropped (softmax shift-invariance).
    scores = jnp.sum(h * w2_ref[...], axis=-1, keepdims=True)   # (TB, S_pad, 1)

    if s_pad != seq_len:   # static: padded sequence rows must not get softmax mass
        pos = jax.lax.broadcasted_iota(jnp.int32, (1, s_pad, 1), 1)
        scores = jnp.where(pos < seq_len, scores, -1e30)

    # --- softmax over the sequence axis (dim=1) -------------------------------
    m = jnp.max(scores, axis=1, keepdims=True)             # (TB, 1, 1)
    e = jnp.exp(scores - m)                                # (TB, S_pad, 1)
    denom = jnp.sum(e, axis=1, keepdims=True)              # (TB, 1, 1)
    # Exact reciprocal: denom is a single vreg, approx would only cost accuracy.
    wts = e * pl.reciprocal(denom, approx=False)           # (TB, S_pad, 1)

    # --- attended values: sum_s w[b,s] * x[b,s,:] ------------------------------
    attended = jnp.sum(wts * x, axis=1)                    # (TB, D)

    # --- fc1 -> relu -> fc2 ----------------------------------------------------
    z = jnp.dot(attended.astype(matmul_dtype), fw1_ref[...].astype(matmul_dtype),
                preferred_element_type=jnp.float32) + fb1_ref[...]
    z = jnp.maximum(z, 0.0)                                # (TB, H)
    out = jnp.sum(z * fw2_ref[...], axis=-1) + fb2_ref[0]  # (TB,)
    out_ref[...] = out.reshape(1, tb).astype(out_ref.dtype)


def nn_with_attention_forward(x, w1, b1, w2, b2, fw1, fb1, fw2, fb2,
                              *, batch_tile=None, use_bf16_matmul=False,
                              vmem_budget_bytes=12 * 1024 * 1024,
                              vmem_limit_bytes=32 * 1024 * 1024):
    """Full NeuralNetworkWithAttention forward.

    x: (B, S, D) f32.  Weights in "transposed nn.Linear" layout:
      w1 (D,H), b1 (H,), w2 (H,1), b2 (1,)     -- attention head
      fw1 (D,H), fb1 (H,), fw2 (H,1), fb2 (1,) -- fc1 / fc2
    Returns (B, 1) f32.

    NOTE: b2 (the attention scorer's output bias) is accepted but NOT applied:
    softmax(scores + c) == softmax(scores), so it cannot affect the result.
    """
    del b2  # softmax shift-invariance: constant score offset is a no-op.
    B, S, D = x.shape
    H = w1.shape[1]

    # Pad S to a sublane multiple so in-kernel reshapes are copy-free.
    S_pad = _round_up(S, 8)
    if batch_tile is None:
        TB = _choose_batch_tile(B, S_pad, D, H, vmem_budget_bytes)
    else:
        TB = max(8, _round_up(batch_tile, 8))
    B_pad = _round_up(B, TB)
    if (B_pad, S_pad) != (B, S):
        x = jnp.pad(x, ((0, B_pad - B), (0, S_pad - S), (0, 0)))

    num_tiles = B_pad // TB
    matmul_dtype = jnp.bfloat16 if use_bf16_matmul else jnp.float32
    kernel = functools.partial(_nn_attention_kernel,
                               seq_len=S, matmul_dtype=matmul_dtype)

    out = pl.pallas_call(
        kernel,
        out_shape=jax.ShapeDtypeStruct((num_tiles, TB), jnp.float32),
        grid_spec=pltpu.PrefetchScalarGridSpec(
            num_scalar_prefetch=0,
            grid=(num_tiles,),
            in_specs=[
                pl.BlockSpec((TB, S_pad, D), lambda i: (i, 0, 0)),    # x tile
                pl.BlockSpec((D, H), lambda i: (0, 0)),               # attn W1
                pl.BlockSpec((1, H), lambda i: (0, 0)),               # attn b1
                pl.BlockSpec((1, H), lambda i: (0, 0)),               # attn W2 (row)
                pl.BlockSpec((D, H), lambda i: (0, 0)),               # fc1 W
                pl.BlockSpec((1, H), lambda i: (0, 0)),               # fc1 b
                pl.BlockSpec((1, H), lambda i: (0, 0)),               # fc2 W (row)
                pl.BlockSpec(memory_space=pltpu.MemorySpace.SMEM),    # fc2 b scalar
            ],
            out_specs=pl.BlockSpec((1, TB), lambda i: (i, 0)),        # lane-dense
        ),
        compiler_params=pltpu.CompilerParams(
            dimension_semantics=("parallel",),
            vmem_limit_bytes=vmem_limit_bytes,
        ),
    )(
        x,
        w1, b1.reshape(1, H), w2.reshape(1, H),
        fw1, fb1.reshape(1, H), fw2.reshape(1, H), fb2,
    )
    return out.reshape(B_pad, 1)[:B]


def reference_forward(x, w1, b1, w2, b2, fw1, fb1, fw2, fb2):
    scores = jnp.tanh(x @ w1 + b1) @ w2 + b2               # (B, S, 1)
    wts = jax.nn.softmax(scores, axis=1)
    attended = jnp.sum(wts * x, axis=1)                    # (B, D)
    return jax.nn.relu(attended @ fw1 + fb1) @ fw2 + fb2   # (B, 1)


if __name__ == "__main__":
    B, S, D, H = 2, 8, 16, 32  # batch, seq, input_dim, hidden_dim

    key = jax.random.PRNGKey(0)
    kx, k1, k2, k3, k4, k5, k6, k7, k8 = jax.random.split(key, 9)

    x = jax.random.normal(kx, (B, S, D), dtype=jnp.float32)
    # PyTorch nn.Linear parameters, stored transposed:
    w1 = jax.random.normal(k1, (D, H), dtype=jnp.float32) * 0.1   # attn Linear(D, H)
    b1 = jax.random.normal(k2, (H,), dtype=jnp.float32) * 0.1
    w2 = jax.random.normal(k3, (H, 1), dtype=jnp.float32) * 0.1   # attn Linear(H, 1)
    b2 = jax.random.normal(k4, (1,), dtype=jnp.float32) * 0.1
    fw1 = jax.random.normal(k5, (D, H), dtype=jnp.float32) * 0.1  # fc1
    fb1 = jax.random.normal(k6, (H,), dtype=jnp.float32) * 0.1
    fw2 = jax.random.normal(k7, (H, 1), dtype=jnp.float32) * 0.1  # fc2
    fb2 = jax.random.normal(k8, (1,), dtype=jnp.float32) * 0.1

    ref = reference_forward(x, w1, b1, w2, b2, fw1, fb1, fw2, fb2)

    # f32 path: exact math, tight tolerance (approx reciprocal removed).
    out = nn_with_attention_forward(x, w1, b1, w2, b2, fw1, fb1, fw2, fb2)
    out = jax.block_until_ready(out)
    assert out.shape == (B, 1)
    assert jnp.allclose(out, ref, atol=1e-5, rtol=1e-5), "f32 mismatch vs reference"

    # bf16-MXU path (throughput option for real sizes): looser tolerance.
    out_bf16 = nn_with_attention_forward(x, w1, b1, w2, b2, fw1, fb1, fw2, fb2,
                                         use_bf16_matmul=True)
    out_bf16 = jax.block_until_ready(out_bf16)
    assert jnp.allclose(out_bf16, ref, atol=5e-2, rtol=5e-2), "bf16 mismatch vs reference"

    print("KERNEL_OK")
</pallas_src>

<mosaic_0001>
module attributes {stable_mosaic.version = 11 : i64} {
  func.func @_nn_attention_kernel(%arg0: i32, %arg1: memref<8x8x16xf32, #tpu.memory_space<vmem>>, %arg2: memref<16x32xf32, #tpu.memory_space<vmem>>, %arg3: memref<1x32xf32, #tpu.memory_space<vmem>>, %arg4: memref<1x32xf32, #tpu.memory_space<vmem>>, %arg5: memref<16x32xf32, #tpu.memory_space<vmem>>, %arg6: memref<1x32xf32, #tpu.memory_space<vmem>>, %arg7: memref<1x32xf32, #tpu.memory_space<vmem>>, %arg8: memref<1xf32, #tpu.memory_space<smem>>, %arg9: memref<1x8xf32, #tpu.memory_space<vmem>>) attributes {dimension_semantics = [#tpu.dimension_semantics<parallel>], iteration_bounds = array<i64: 1>, scalar_prefetch = 0 : i64, scratch_operands = 0 : i64, tpu.core_type = #tpu.core_type<tc>, window_params = [{transform_indices = @transform_0, window_bounds = array<i64: 8, 8, 16>}, {pipeline_mode = #tpu.pipeline_mode<synchronous>, transform_indices = @transform_1, window_bounds = array<i64: 16, 32>}, {pipeline_mode = #tpu.pipeline_mode<synchronous>, transform_indices = @transform_2, window_bounds = array<i64: 1, 32>}, {pipeline_mode = #tpu.pipeline_mode<synchronous>, transform_indices = @transform_3, window_bounds = array<i64: 1, 32>}, {pipeline_mode = #tpu.pipeline_mode<synchronous>, transform_indices = @transform_4, window_bounds = array<i64: 16, 32>}, {pipeline_mode = #tpu.pipeline_mode<synchronous>, transform_indices = @transform_5, window_bounds = array<i64: 1, 32>}, {pipeline_mode = #tpu.pipeline_mode<synchronous>, transform_indices = @transform_6, window_bounds = array<i64: 1, 32>}, {transform_indices = @transform_7, window_bounds = array<i64: 1>}, {transform_indices = @transform_8, window_bounds = array<i64: 1, 8>}]} {
    %c0 = arith.constant 0 : index
    %c0_0 = arith.constant 0 : index
    %c0_1 = arith.constant 0 : index
    %0 = vector.load %arg1[%c0, %c0_0, %c0_1] : memref<8x8x16xf32, #tpu.memory_space<vmem>>, vector<8x8x16xf32>
    %1 = vector.shape_cast %0 : vector<8x8x16xf32> to vector<64x16xf32>
    %c0_2 = arith.constant 0 : index
    %c0_3 = arith.constant 0 : index
    %2 = vector.load %arg2[%c0_2, %c0_3] : memref<16x32xf32, #tpu.memory_space<vmem>>, vector<16x32xf32>
    %cst = arith.constant dense<0.000000e+00> : vector<64x32xf32>
    %3 = tpu.matmul %1, %2, %cst {dimension_numbers = #tpu.dot_dimension_numbers<[1], [0], [0], [1], [0, 0, 1, 1], [], []>} : vector<64x16xf32>, vector<16x32xf32>, vector<64x32xf32> -> vector<64x32xf32>
    %c0_4 = arith.constant 0 : index
    %c0_5 = arith.constant 0 : index
    %4 = vector.load %arg3[%c0_4, %c0_5] : memref<1x32xf32, #tpu.memory_space<vmem>>, vector<1x32xf32>
    %5 = vector.broadcast %4 : vector<1x32xf32> to vector<64x32xf32>
    %6 = arith.addf %3, %5 : vector<64x32xf32>
    %7 = math.tanh %6 : vector<64x32xf32>
    %8 = vector.shape_cast %7 : vector<64x32xf32> to vector<8x8x32xf32>
    %c0_6 = arith.constant 0 : index
    %c0_7 = arith.constant 0 : index
    %9 = vector.load %arg4[%c0_6, %c0_7] : memref<1x32xf32, #tpu.memory_space<vmem>>, vector<1x32xf32>
    %10 = vector.shape_cast %9 : vector<1x32xf32> to vector<1x1x32xf32>
    %11 = vector.broadcast %10 : vector<1x1x32xf32> to vector<8x8x32xf32>
    %12 = arith.mulf %8, %11 : vector<8x8x32xf32>
    %cst_8 = arith.constant dense<0.000000e+00> : vector<8x8xf32>
    %13 = vector.multi_reduction <add>, %12, %cst_8 [2] : vector<8x8x32xf32> to vector<8x8xf32>
    %14 = vector.shape_cast %13 : vector<8x8xf32> to vector<8x8x1xf32>
    %cst_9 = arith.constant dense<0xFF800000> : vector<8x1xf32>
    %15 = vector.multi_reduction <maximumf>, %14, %cst_9 [1] : vector<8x8x1xf32> to vector<8x1xf32>
    %16 = vector.shape_cast %15 : vector<8x1xf32> to vector<8x1x1xf32>
    %17 = vector.broadcast %16 : vector<8x1x1xf32> to vector<8x8x1xf32>
    %18 = arith.subf %14, %17 : vector<8x8x1xf32>
    %19 = math.exp %18 : vector<8x8x1xf32>
    %cst_10 = arith.constant dense<0.000000e+00> : vector<8x1xf32>
    %20 = vector.multi_reduction <add>, %19, %cst_10 [1] : vector<8x8x1xf32> to vector<8x1xf32>
    %21 = vector.shape_cast %20 : vector<8x1xf32> to vector<8x1x1xf32>
    %22 = tpu.reciprocal %21 : vector<8x1x1xf32> -> vector<8x1x1xf32>
    %23 = vector.broadcast %22 : vector<8x1x1xf32> to vector<8x8x1xf32>
    %24 = arith.mulf %19, %23 : vector<8x8x1xf32>
    %25 = vector.broadcast %24 : vector<8x8x1xf32> to vector<8x8x16xf32>
    %26 = arith.mulf %25, %0 : vector<8x8x16xf32>
    %cst_11 = arith.constant dense<0.000000e+00> : vector<8x16xf32>
    %27 = vector.multi_reduction <add>, %26, %cst_11 [1] : vector<8x8x16xf32> to vector<8x16xf32>
    %c0_12 = arith.constant 0 : index
    %c0_13 = arith.constant 0 : index
    %28 = vector.load %arg5[%c0_12, %c0_13] : memref<16x32xf32, #tpu.memory_space<vmem>>, vector<16x32xf32>
    %cst_14 = arith.constant dense<0.000000e+00> : vector<8x32xf32>
    %29 = tpu.matmul %27, %28, %cst_14 {dimension_numbers = #tpu.dot_dimension_numbers<[1], [0], [0], [1], [0, 0, 1, 1], [], []>} : vector<8x16xf32>, vector<16x32xf32>, vector<8x32xf32> -> vector<8x32xf32>
    %c0_15 = arith.constant 0 : index
    %c0_16 = arith.constant 0 : index
    %30 = vector.load %arg6[%c0_15, %c0_16] : memref<1x32xf32, #tpu.memory_space<vmem>>, vector<1x32xf32>
    %31 = vector.broadcast %30 : vector<1x32xf32> to vector<8x32xf32>
    %32 = arith.addf %29, %31 : vector<8x32xf32>
    %cst_17 = arith.constant 0.000000e+00 : f32
    %33 = vector.broadcast %cst_17 : f32 to vector<8x32xf32>
    %34 = arith.maximumf %32, %33 : vector<8x32xf32>
    %c0_18 = arith.constant 0 : index
    %c0_19 = arith.constant 0 : index
    %35 = vector.load %arg7[%c0_18, %c0_19] : memref<1x32xf32, #tpu.memory_space<vmem>>, vector<1x32xf32>
    %36 = vector.broadcast %35 : vector<1x32xf32> to vector<8x32xf32>
    %37 = arith.mulf %34, %36 : vector<8x32xf32>
    %cst_20 = arith.constant dense<0.000000e+00> : vector<8xf32>
    %38 = vector.multi_reduction <add>, %37, %cst_20 [1] : vector<8x32xf32> to vector<8xf32>
    %c0_21 = arith.constant 0 : index
    %39 = memref.load %arg8[%c0_21] : memref<1xf32, #tpu.memory_space<smem>>
    %40 = vector.broadcast %39 : f32 to vector<8xf32>
    %41 = arith.addf %38, %40 : vector<8xf32>
    %42 = vector.shape_cast %41 : vector<8xf32> to vector<1x8xf32>
    %c0_22 = arith.constant 0 : index
    %c0_23 = arith.constant 0 : index
    %43 = vector.load %arg9[%c0_22, %c0_23] : memref<1x8xf32, #tpu.memory_space<vmem>>, vector<1x8xf32>
    tpu.vector_store %arg9[%c0_22, %c0_23], %42 {strides = array<i32>} : memref<1x8xf32, #tpu.memory_space<vmem>>, vector<1x8xf32>,
    return
  }
  func.func @transform_0(%arg0: i32) -> (i32, i32, i32) {
    %c0_i32 = arith.constant 0 : i32
    %c0_i32_0 = arith.constant 0 : i32
    %c0_i32_1 = arith.constant 0 : i32
    return %arg0, %c0_i32, %c0_i32_0 : i32, i32, i32
  }
  func.func @transform_1(%arg0: i32) -> (i32, i32) {
    %c0_i32 = arith.constant 0 : i32
    %c0_i32_0 = arith.constant 0 : i32
    %c0_i32_1 = arith.constant 0 : i32
    return %c0_i32, %c0_i32_0 : i32, i32
  }
  func.func @transform_2(%arg0: i32) -> (i32, i32) {
    %c0_i32 = arith.constant 0 : i32
    %c0_i32_0 = arith.constant 0 : i32
    %c0_i32_1 = arith.constant 0 : i32
    return %c0_i32, %c0_i32_0 : i32, i32
  }
  func.func @transform_3(%arg0: i32) -> (i32, i32) {
    %c0_i32 = arith.constant 0 : i32
    %c0_i32_0 = arith.constant 0 : i32
    %c0_i32_1 = arith.constant 0 : i32
    return %c0_i32, %c0_i32_0 : i32, i32
  }
  func.func @transform_4(%arg0: i32) -> (i32, i32) {
    %c0_i32 = arith.constant 0 : i32
    %c0_i32_0 = arith.constant 0 : i32
    %c0_i32_1 = arith.constant 0 : i32
    return %c0_i32, %c0_i32_0 : i32, i32
  }
  func.func @transform_5(%arg0: i32) -> (i32, i32) {
    %c0_i32 = arith.constant 0 : i32
    %c0_i32_0 = arith.constant 0 : i32
    %c0_i32_1 = arith.constant 0 : i32
    return %c0_i32, %c0_i32_0 : i32, i32
  }
  func.func @transform_6(%arg0: i32) -> (i32, i32) {
    %c0_i32 = arith.constant 0 : i32
    %c0_i32_0 = arith.constant 0 : i32
    %c0_i32_1 = arith.constant 0 : i32
    return %c0_i32, %c0_i32_0 : i32, i32
  }
  func.func @transform_7(%arg0: i32) -> i32 {
    %c0_i32 = arith.constant 0 : i32
    %c0_i32_0 = arith.constant 0 : i32
    return %c0_i32 : i32
  }
  func.func @transform_8(%arg0: i32) -> (i32, i32) {
    %c0_i32 = arith.constant 0 : i32
    %c0_i32_0 = arith.constant 0 : i32
    return %arg0, %c0_i32 : i32, i32
  }
}

</mosaic_0001>

<bundles_post_ra>
// kernel: tpu_custom_call.1
= control target key start
LH: loop header
LB: loop body
LE: loop exit
PB: predicated region body
PF: predicated region fallthrough
CT: control target
= control target key end

     0   :  { %14 = vsyncpa [#allocation4], 0  ;;  %s992_s0 = inlined_call_operand.hbm [shape: f32[8,8,16], index: 0, kind: input, shape index: {}]   ;;  %s993_s1 = inlined_call_operand.hbm [shape: f32[16,32], index: 1, kind: input, shape index: {}]   ;;  %s994_s2 = inlined_call_operand.vmem [shape: f32[1,32], index: 2, kind: input, shape index: {}]   ;;  %s995_s3 = inlined_call_operand.vmem [shape: f32[1,32], index: 3, kind: input, shape index: {}]   ;;  %s996_s4 = inlined_call_operand.vmem [shape: f32[16,32], index: 4, kind: input, shape index: {}]   ;;  %s997_s5 = inlined_call_operand.vmem [shape: f32[1,32], index: 5, kind: input, shape index: {}]   ;;  %s998_s6 = inlined_call_operand.vmem [shape: f32[1,32], index: 6, kind: input, shape index: {}]   ;;  %s999_s7 = inlined_call_operand.<no memory space> [shape: f32[1], index: 7, kind: input, shape index: {}]   ;;  %s1000_s8 = inlined_call_operand.hbm [shape: f32[1,8], index: 8, kind: output, shape index: {}]  }
   0x1   :  { %15 = vsyncpa [#allocation7], 0 }
   0x2   :  { %16 = vsyncpa [#allocation5], 0  ;;  %s784_s27 = smov [#allocation3]   ;;  %s712_s9 = scalar_lea.hbm %s992_s0, 1024 }
   0x3   :  { %s22_s28 = sshll.u32 %s784_s27, 4  ;;  %p713_p0 = scmp.ne.s32.totalorder %s992_s0, %s712_s9  ;;  %s23_s28 = int_to_ptr.vmem [resolvable:$true] %s22_s28 }
   0x4   :  { %p716_p1 = scmp.lt.u32.totalorder %s712_s9, %s992_s0 }
   0x6   :  { %p718_p2 = pnand %p716_p1, %p713_p0 }
   0x8   :  { %721 = shalt.err (!%p718_p2)
}
   0x9   :  { %s722_s14 = scalar_lea.vmem %s23_s28, 1024  ;;  %p727_p4 = scmp.lt.s32.totalorder %s23_s28, %s23_s28 }
   0xa   :  { %p723_p3 = scmp.ne.s32.totalorder %s23_s28, %s722_s14  ;;  %p728_p5 = scmp.lt.s32.totalorder %s722_s14, %s722_s14 }
   0xc   :  { %p729_p6 = por %p728_p5, %p727_p4 }
   0xe   :  { %p730_p7 = pnand %p729_p6, %p723_p3 }
  0x10   :  { %733 = shalt.err (!%p730_p7)
}
  0x11   :  { %s785_s15 = smov 128   ;;  %s786_s16 = smov 8  }
  0x12   :  { %28 = dma.hbm_to_vmem [thread:$0]  %s992_s0, 1024, %s23_s28, [#allocation4], %s785_s15, %s785_s15, %s786_s16  }
  0x13   :  { %s787_s19 = smov [#allocation6]   ;;  %s734_s23 = scalar_lea.hbm %s993_s1, 256 }
  0x14   :  { %s34_s20 = sshll.u32 %s787_s19, 4  ;;  %p735_p8 = scmp.ne.s32.totalorder %s993_s1, %s734_s23  ;;  %s35_s20 = int_to_ptr.vmem [resolvable:$true] %s34_s20 }
  0x15   :  { %p738_p9 = scmp.lt.u32.totalorder %s734_s23, %s993_s1 }
  0x17   :  { %p740_p10 = pnand %p738_p9, %p735_p8 }
  0x19   :  { %743 = shalt.err (!%p740_p10)
}
  0x1a   :  { %s744_s29 = scalar_lea.vmem %s35_s20, 256  ;;  %p749_p12 = scmp.lt.s32.totalorder %s35_s20, %s35_s20 }
  0x1b   :  { %p745_p11 = scmp.ne.s32.totalorder %s35_s20, %s744_s29  ;;  %p750_p13 = scmp.lt.s32.totalorder %s744_s29, %s744_s29 }
  0x1d   :  { %p751_p0 = por %p750_p13, %p749_p12 }
  0x1f   :  { %p752_p1 = pnand %p751_p0, %p745_p11 }
  0x21   :  { %755 = shalt.err (!%p752_p1)
}
  0x22   :  { %40 = dma.hbm_to_vmem [thread:$0]  %s993_s1, 256, %s35_s20, [#allocation7], %s785_s15, %s785_s15, %s786_s16  }
  0x23   :  { %778 = dma.done.wait [#allocation4], 1024  }
  0x24   :  { %779 = vsyncadd [#allocation4], 4294966272 }
  0x25   :  { %780 = dma.done.wait [#allocation7], 256  }
  0x26   :  { %781 = vsyncadd [#allocation7], 4294967040  ;;  %vm76_vm0 = vcmask 130048   ;;  %v67_v0 = vld [vmem:[#allocation6] sm:$0xff]  ;;  %v68_v1 = vld [vmem:[#allocation6 + $0x8] sm:$0xff]  ;;  %vm229_vm1 = vcmask 261120  }
  0x27   :  { %v861_v2 = vld [vmem:[#allocation3] sm:$0xff]  ;;  %v647_v3 = vpack.c.bf16 %v68_v1, %v67_v0  ;;  %v865_v4 = vld [vmem:[#allocation3 + $0x30] sm:$0xff]  ;;  %v867_v5 = vld [vmem:[#allocation3 + $0x8] sm:$0xff]  ;;  %v788_v55 = vmov 0.0|0.0   ;;  %vm789_vm2 = vmmov 0   ;;  %v790_v57 = vmov 0.0  }
  0x28   :  { %628 = vmatprep.mubr.msk.f32.mxu0 %vm76_vm0, %v861_v2  ;;  %v869_v6 = vld [vmem:[#allocation3 + $0x38] sm:$0xff]  ;;  %v871_v7 = vld [vmem:[#allocation3 + $0x10] sm:$0xff]  ;;  %637 = vmatprep.mubr.msk.f32.mxu1 %vm76_vm0, %v865_v4  ;;  %v883_v9 = vld [vmem:[#allocation3 + $0x20] sm:$0xff]  ;;  %vm471_vm3 = vcmask 1041409   ;;  %vm473_vm4 = vcmask 1042434   ;;  %vm475_vm5 = vcmask 1043459  }
  0x29   :  { %648 = vmatprep.subr.bf16.mxu0 %v647_v3  ;;  %654 = vmatprep.subr.bf16.mxu1 %v647_v3  ;;  %v881_v8 = vld [vmem:[#allocation3 + $0x18] sm:$0xff]  ;;  %v889_v10 = vld [vmem:[#allocation3 + $0x28] sm:$0xff]  ;;  %v598_v11 = vld [vmem:[%s994_s2] ss:$0 sm:$0xff]  ;;  %vm477_vm6 = vcmask 1044484   ;;  %vm479_vm7 = vcmask 1045509  }
  0x2a   :  { %650 = vmatpush3.bf16.msra.mxu0 %v647_v3  ;;  %655 = vmatpush3.bf16.msra.mxu1 %v647_v3  ;;  %v607_v28 = vld [vmem:[%s995_s3] ss:$0 sm:$0xff]  ;;  %v455_v54 = vld [vmem:[%s996_s4 + $0x8] sm:$0xff]  ;;  %vm481_vm8 = vcmask 1046534   ;;  %vm483_vm9 = vcmask 1047559   ;;  %vm580_vm10 = vcmask 57344  }
  0x2b   :  { %v454_v53 = vld [vmem:[%s996_s4] sm:$0xff]  ;;  %651 = vmatprep.subr.bf16.mxu1 %v788_v55 }
  0x2c   :  { %v652_v56 = vpack.c.bf16 %v455_v54, %v454_v53 }
  0x2d   :  { %629 = vmatmul.mubr.msk.f32.vlgmr.msra.gmra.mrb[0].mxu0 %vm76_vm0, %v867_v5  ;;  %638 = vmatmul.mubr.msk.f32.vlgmr.msra.gmra.mrb[0].mxu1 %vm76_vm0, %v869_v6 }
  0x2e   :  { %631 = vmatprep.mubr.msk.f32.mxu0 %vm76_vm0, %v871_v7  ;;  %644 = vmatprep.mubr.msk.f32.mxu1 %vm789_vm2, %v790_v57 }
  0x2f   :  { %653 = vmatpush3.bf16.msra.mxu1 %v652_v56 }
  0x31   :  { %632 = vmatmul.mubr.msk.f32.gmra.mrb[2].mxu0 %vm76_vm0, %v881_v8 }
  0x32   :  { %634 = vmatprep.mubr.msk.f32.mxu0 %vm76_vm0, %v883_v9 }
  0x35   :  { %635 = vmatmul.mubr.msk.f32.gmra.mrb[4].mxu0 %vm76_vm0, %v889_v10 }
 0x100   :  { %v630_v12 = vpop.f32.mrb[0].mxu0  ;;  %v639_v13 = vpop.f32.mrb[0].mxu1 }
 0x101   :  { %v173_v14 = vadd.f32 %v630_v12, %v598_v11  ;;  %v167_v15 = vpop.f32.mrb[1].mxu0  ;;  %v197_v16 = vpop.f32.mrb[1].mxu1  ;;  %v203_v27 = vadd.f32 %v639_v13, %v598_v11 }
 0x102   :  { %v168_v17 = vadd.f32 %v598_v11, %v167_v15  ;;  %v198_v22 = vadd.f32 %v598_v11, %v197_v16 }
 0x103   :  { %664 = vtanh.f32 %v173_v14 }
 0x104   :  { %666 = vtanh.f32 %v168_v17  ;;  %v633_v18 = vpop.f32.mrb[2].mxu0 }
 0x105   :  { %v183_v19 = vadd.f32 %v633_v18, %v598_v11  ;;  %v177_v20 = vpop.f32.mrb[3].mxu0 }
 0x106   :  { %v178_v21 = vadd.f32 %v598_v11, %v177_v20 }
 0x107   :  { %668 = vtanh.f32 %v183_v19 }
 0x108   :  { %670 = vtanh.f32 %v178_v21  ;;  %v636_v23 = vpop.f32.mrb[4].mxu0 }
 0x109   :  { %v193_v24 = vadd.f32 %v636_v23, %v598_v11  ;;  %v187_v25 = vpop.f32.mrb[5].mxu0  ;;  %672 = vtanh.f32 %v198_v22 }
 0x10a   :  { %v188_v26 = vadd.f32 %v598_v11, %v187_v25 }
 0x10b   :  { %674 = vtanh.f32 %v193_v24 }
 0x10c   :  { %676 = vtanh.f32 %v188_v26 }
 0x10d   :  { %v665_v29 = vpop.eup %664  ;;  %678 = vtanh.f32 %v203_v27 }
 0x10e   :  { %v667_v30 = vpop.eup %666  ;;  %v222_v31 = vmul.f32 %v665_v29, %v607_v28 }
 0x10f   :  { %v221_v33 = vmul.f32 %v667_v30, %v607_v28 }
 0x110   :  { %v233_v32 = vsel %vm229_vm1, %v222_v31, 0.0 }
 0x111   :  { %v669_v34 = vpop.eup %668  ;;  %234 = vadd.xlane.f32.xlu0 %v233_v32  ;;  %v230_v39 = vsel %vm229_vm1, %v221_v33, 0.0 }
 0x112   :  { %v671_v35 = vpop.eup %670  ;;  %v224_v36 = vmul.f32 %v669_v34, %v607_v28 }
 0x113   :  { %v673_v37 = vpop.eup %672  ;;  %v223_v40 = vmul.f32 %v671_v35, %v607_v28 }
 0x114   :  { %v239_v38 = vsel %vm229_vm1, %v224_v36, 0.0  ;;  %v227_v44 = vmul.f32 %v673_v37, %v607_v28 }
 0x115   :  { %v675_v41 = vpop.eup %674  ;;  %240 = vadd.xlane.f32.xlu1 %v239_v38  ;;  %231 = vadd.xlane.f32.xlu0 %v230_v39  ;;  %v236_v45 = vsel %vm229_vm1, %v223_v40, 0.0 }
 0x116   :  { %v677_v42 = vpop.eup %676  ;;  %v226_v46 = vmul.f32 %v675_v41, %v607_v28  ;;  %v248_v49 = vsel %vm229_vm1, %v227_v44, 0.0 }
 0x117   :  { %v225_v43 = vmul.f32 %v677_v42, %v607_v28  ;;  %v679_v47 = vpop.eup %678 }
 0x118   :  { %v245_v50 = vsel %vm229_vm1, %v226_v46, 0.0  ;;  %v228_v51 = vmul.f32 %v679_v47, %v607_v28 }
 0x119   :  { %237 = vadd.xlane.f32.xlu1 %v236_v45  ;;  %v242_v48 = vsel %vm229_vm1, %v225_v43, 0.0 }
 0x11a   :  { %243 = vadd.xlane.f32.xlu0 %v242_v48  ;;  %v251_v52 = vsel %vm229_vm1, %v228_v51, 0.0 }
 0x11d   :  { %246 = vadd.xlane.f32.xlu1 %v245_v50 }
 0x11e   :  { %249 = vadd.xlane.f32.xlu0 %v248_v49 }
 0x121   :  { %252 = vadd.xlane.f32.xlu1 %v251_v52 }
 0x19e   :  { %v235_v58 = vpop.xlane.xlu0 %234 }
 0x19f   :  { %v260_v59 = vrot.slane %v235_v58, 4 }
 0x1a1   :  { %v261_v60 = vmax.f32 %v235_v58, %v260_v59 }
 0x1a2   :  { %v241_v61 = vpop.xlane.xlu1 %240  ;;  %v232_v62 = vpop.xlane.xlu0 %231 }
 0x1a3   :  { %v262_v63 = vrot.slane %v261_v60, 2  ;;  %v272_v0 = vrot.slane %v241_v61, 4  ;;  %v254_v1 = vrot.slane %v232_v62, 4 }
 0x1a5   :  { %v263_v3 = vmax.f32 %v261_v60, %v262_v63  ;;  %v273_v11 = vmax.f32 %v241_v61, %v272_v0  ;;  %v255_v12 = vmax.f32 %v232_v62, %v254_v1 }
 0x1a6   :  { %v238_v13 = vpop.xlane.xlu1 %237 }
 0x1a7   :  { %v264_v14 = vrot.slane %v263_v3, 1  ;;  %v274_v15 = vrot.slane %v273_v11, 2  ;;  %v256_v16 = vrot.slane %v255_v12, 2  ;;  %v266_v17 = vrot.slane %v238_v13, 4  ;;  %v244_v18 = vpop.xlane.xlu0 %243 }
 0x1a8   :  { %v278_v19 = vrot.slane %v244_v18, 4 }
 0x1a9   :  { %v265_v20 = vmax.f32 %v263_v3, %v264_v14  ;;  %v275_v21 = vmax.f32 %v273_v11, %v274_v15  ;;  %v257_v22 = vmax.f32 %v255_v12, %v256_v16  ;;  %v267_v23 = vmax.f32 %v238_v13, %v266_v17 }
 0x1aa   :  { %v279_v24 = vmax.f32 %v244_v18, %v278_v19  ;;  %v247_v25 = vpop.xlane.xlu1 %246 }
 0x1ab   :  { %v303_v26 = vsub.f32 %v235_v58, %v265_v20  ;;  %v276_v27 = vrot.slane %v275_v21, 1  ;;  %v258_v28 = vrot.slane %v257_v22, 1  ;;  %v268_v29 = vrot.slane %v267_v23, 2  ;;  %v250_v30 = vpop.xlane.xlu0 %249 }
 0x1ac   :  { %v280_v31 = vrot.slane %v279_v24, 2  ;;  %v284_v32 = vrot.slane %v247_v25, 4  ;;  %v290_v33 = vrot.slane %v250_v30, 4 }
 0x1ad   :  { %v312_v34 = vmul.f32 1.442695, %v303_v26  ;;  %v277_v35 = vmax.f32 %v275_v21, %v276_v27  ;;  %v259_v36 = vmax.f32 %v257_v22, %v258_v28  ;;  %v269_v37 = vmax.f32 %v267_v23, %v268_v29 }
 0x1ae   :  { %v281_v38 = vmax.f32 %v279_v24, %v280_v31  ;;  %v285_v39 = vmax.f32 %v247_v25, %v284_v32  ;;  %v291_v40 = vmax.f32 %v250_v30, %v290_v33  ;;  %v253_v41 = vpop.xlane.xlu1 %252 }
 0x1af   :  { %680 = vpow2.f32 %v312_v34  ;;  %v305_v42 = vsub.f32 %v241_v61, %v277_v35  ;;  %v302_v43 = vsub.f32 %v232_v62, %v259_v36  ;;  %v270_v44 = vrot.slane %v269_v37, 1 }
 0x1b0   :  { %v282_v45 = vrot.slane %v281_v38, 1  ;;  %v286_v46 = vrot.slane %v285_v39, 2  ;;  %v292_v47 = vrot.slane %v291_v40, 2  ;;  %v296_v48 = vrot.slane %v253_v41, 4 }
 0x1b1   :  { %v316_v49 = vmul.f32 1.442695, %v305_v42  ;;  %v310_v50 = vmul.f32 1.442695, %v302_v43  ;;  %v271_v51 = vmax.f32 %v269_v37, %v270_v44 }
 0x1b2   :  { %v283_v52 = vmax.f32 %v281_v38, %v282_v45  ;;  %v287_v53 = vmax.f32 %v285_v39, %v286_v46  ;;  %v293_v54 = vmax.f32 %v291_v40, %v292_v47  ;;  %v297_v55 = vmax.f32 %v253_v41, %v296_v48 }
 0x1b3   :  { %682 = vpow2.f32 %v316_v49  ;;  %v304_v56 = vsub.f32 %v238_v13, %v271_v51 }
 0x1b4   :  { %684 = vpow2.f32 %v310_v50  ;;  %v306_v57 = vsub.f32 %v244_v18, %v283_v52  ;;  %v288_v58 = vrot.slane %v287_v53, 1  ;;  %v294_v59 = vrot.slane %v293_v54, 1 }
 0x1b5   :  { %v314_v60 = vmul.f32 1.442695, %v304_v56  ;;  %v298_v61 = vrot.slane %v297_v55, 2 }
 0x1b6   :  { %v318_v62 = vmul.f32 1.442695, %v306_v57  ;;  %v289_v63 = vmax.f32 %v287_v53, %v288_v58  ;;  %v295_v0 = vmax.f32 %v293_v54, %v294_v59 }
 0x1b7   :  { %686 = vpow2.f32 %v314_v60  ;;  %v299_v1 = vmax.f32 %v297_v55, %v298_v61 }
 0x1b8   :  { %688 = vpow2.f32 %v318_v62  ;;  %v307_v3 = vsub.f32 %v247_v25, %v289_v63  ;;  %v308_v11 = vsub.f32 %v250_v30, %v295_v0 }
 0x1b9   :  { %v913_v12 = vpop.eup %680  ;;  %v300_v14 = vrot.slane %v299_v1, 1 }
 0x1ba   :  { %v332_v15 = vrot.slane %v913_v12, 4  ;;  %v320_v13 = vmul.f32 1.442695, %v307_v3  ;;  %v322_v16 = vmul.f32 1.442695, %v308_v11 }
 0x1bb   :  { %v301_v17 = vmax.f32 %v299_v1, %v300_v14 }
 0x1bc   :  { %v333_v18 = vadd.f32 %v913_v12, %v332_v15  ;;  %690 = vpow2.f32 %v320_v13 }
 0x1bd   :  { %v917_v19 = vpop.eup %682  ;;  %692 = vpow2.f32 %v322_v16  ;;  %v309_v20 = vsub.f32 %v253_v41, %v301_v17 }
 0x1be   :  { %v919_v21 = vpop.eup %684  ;;  %v334_v22 = vrot.slane %v333_v18, 2  ;;  %v344_v23 = vrot.slane %v917_v19, 4 }
 0x1bf   :  { %v326_v24 = vrot.slane %v919_v21, 4  ;;  %v324_v25 = vmul.f32 1.442695, %v309_v20 }
 0x1c0   :  { %v335_v26 = vadd.f32 %v334_v22, %v333_v18  ;;  %v345_v27 = vadd.f32 %v917_v19, %v344_v23 }
 0x1c1   :  { %v924_v28 = vpop.eup %686  ;;  %v327_v29 = vadd.f32 %v919_v21, %v326_v24  ;;  %694 = vpow2.f32 %v324_v25 }
 0x1c2   :  { %v927_v30 = vpop.eup %688  ;;  %v336_v31 = vrot.slane %v335_v26, 1  ;;  %v346_v32 = vrot.slane %v345_v27, 2  ;;  %v338_v33 = vrot.slane %v924_v28, 4 }
 0x1c3   :  { %v328_v34 = vrot.slane %v327_v29, 2  ;;  %v350_v35 = vrot.slane %v927_v30, 4 }
 0x1c4   :  { %v337_v36 = vadd.f32 %v336_v31, %v335_v26  ;;  %v347_v37 = vadd.f32 %v346_v32, %v345_v27  ;;  %v339_v38 = vadd.f32 %v924_v28, %v338_v33 }
 0x1c5   :  { %v329_v39 = vadd.f32 %v328_v34, %v327_v29  ;;  %v351_v40 = vadd.f32 %v927_v30, %v350_v35 }
 0x1c6   :  { %v933_v41 = vpop.eup %690  ;;  %696 = vrcp.f32 %v337_v36  ;;  %v348_v42 = vrot.slane %v347_v37, 1  ;;  %v340_v43 = vrot.slane %v339_v38, 2 }
 0x1c7   :  { %v935_v44 = vpop.eup %692  ;;  %v330_v45 = vrot.slane %v329_v39, 1  ;;  %v352_v46 = vrot.slane %v351_v40, 2  ;;  %v356_v47 = vrot.slane %v933_v41, 4 }
 0x1c8   :  { %v349_v48 = vadd.f32 %v348_v42, %v347_v37  ;;  %v341_v49 = vadd.f32 %v340_v43, %v339_v38  ;;  %v362_v50 = vrot.slane %v935_v44, 4 }
 0x1c9   :  { %v331_v51 = vadd.f32 %v330_v45, %v329_v39  ;;  %v353_v52 = vadd.f32 %v352_v46, %v351_v40  ;;  %v357_v53 = vadd.f32 %v933_v41, %v356_v47 }
 0x1ca   :  { %698 = vrcp.f32 %v349_v48  ;;  %v342_v54 = vrot.slane %v341_v49, 1  ;;  %v363_v55 = vadd.f32 %v935_v44, %v362_v50 }
 0x1cb   :  { %v941_v56 = vpop.eup %694  ;;  %700 = vrcp.f32 %v331_v51  ;;  %v354_v57 = vrot.slane %v353_v52, 1  ;;  %v358_v58 = vrot.slane %v357_v53, 2 }
 0x1cc   :  { %v343_v59 = vadd.f32 %v342_v54, %v341_v49  ;;  %v364_v60 = vrot.slane %v363_v55, 2  ;;  %v368_v61 = vrot.slane %v941_v56, 4 }
 0x1cd   :  { %v355_v62 = vadd.f32 %v354_v57, %v353_v52  ;;  %v359_v63 = vadd.f32 %v358_v58, %v357_v53 }
 0x1ce   :  { %702 = vrcp.f32 %v343_v59  ;;  %v365_v0 = vadd.f32 %v364_v60, %v363_v55  ;;  %v369_v1 = vadd.f32 %v941_v56, %v368_v61 }
 0x1cf   :  { %704 = vrcp.f32 %v355_v62  ;;  %v360_v3 = vrot.slane %v359_v63, 1 }
 0x1d0   :  { %v697_v11 = vpop.eup %696  ;;  %v366_v14 = vrot.slane %v365_v0, 1  ;;  %v370_v15 = vrot.slane %v369_v1, 2 }
 0x1d1   :  { %v383_v13 = vmul.f32 %v697_v11, %v913_v12  ;;  %v361_v16 = vadd.f32 %v360_v3, %v359_v63 }
 0x1d2   :  { %v371_v17 = vadd.f32 %v370_v15, %v369_v1  ;;  %v367_v18 = vadd.f32 %v366_v14, %v365_v0 }
 0x1d3   :  { %706 = vrcp.f32 %v361_v16  ;;  %v391_v20 = vmul.f32 %v383_v13, %v867_v5 }
 0x1d4   :  { %v699_v22 = vpop.eup %698  ;;  %v372_v23 = vrot.slane %v371_v17, 1  ;;  %708 = vrcp.f32 %v367_v18 }
 0x1d5   :  { %v701_v24 = vpop.eup %700  ;;  %v385_v25 = vmul.f32 %v699_v22, %v917_v19  ;;  %v405_v26 = vsel %vm76_vm0, %v391_v20, 0.0 }
 0x1d6   :  { %v382_v27 = vmul.f32 %v701_v24, %v919_v21  ;;  %v373_v29 = vadd.f32 %v372_v23, %v371_v17  ;;  %v406_v31 = vrot.slane %v405_v26, 4 }
 0x1d7   :  { %v393_v12 = vmul.f32 %v385_v25, %v881_v8 }
 0x1d8   :  { %v703_v32 = vpop.eup %702  ;;  %710 = vrcp.f32 %v373_v29  ;;  %v390_v33 = vmul.f32 %v382_v27, %v861_v2  ;;  %v407_v34 = vadd.f32 %v406_v31, %v405_v26 }
 0x1d9   :  { %v705_v5 = vpop.eup %704  ;;  %v384_v35 = vmul.f32 %v703_v32, %v924_v28  ;;  %v419_v36 = vsel %vm76_vm0, %v393_v12, 0.0 }
 0x1da   :  { %v386_v19 = vmul.f32 %v705_v5, %v927_v30  ;;  %v398_v37 = vsel %vm76_vm0, %v390_v33, 0.0  ;;  %v408_v38 = vrot.slane %v407_v34, 2  ;;  %v420_v21 = vrot.slane %v419_v36, 4 }
 0x1db   :  { %v392_v39 = vmul.f32 %v384_v35, %v871_v7  ;;  %v399_v40 = vrot.slane %v398_v37, 4 }
 0x1dc   :  { %v394_v8 = vmul.f32 %v386_v19, %v883_v9  ;;  %v421_v42 = vadd.f32 %v420_v21, %v419_v36  ;;  %v409_v47 = vadd.f32 %v408_v38, %v407_v34 }
 0x1dd   :  { %v707_v43 = vpop.eup %706  ;;  %v400_v2 = vadd.f32 %v399_v40, %v398_v37  ;;  %v412_v45 = vsel %vm76_vm0, %v392_v39, 0.0 }
 0x1de   :  { %v709_v46 = vpop.eup %708  ;;  %v387_v28 = vmul.f32 %v707_v43, %v933_v41  ;;  %v413_v48 = vrot.slane %v412_v45, 4  ;;  %v422_v30 = vrot.slane %v421_v42, 2  ;;  %v426_v51 = vsel %vm76_vm0, %v394_v8, 0.0 }
 0x1df   :  { %v388_v49 = vmul.f32 %v709_v46, %v935_v44  ;;  %v401_v50 = vrot.slane %v400_v2, 2  ;;  %v427_v55 = vrot.slane %v426_v51, 4  ;;  %v410_v58 = vrot.slane %v409_v47, 1  ;;  %v610_v46 = vld [vmem:[%s998_s6] ss:$0 sm:$0xff] }
 0x1e0   :  { %v395_v7 = vmul.f32 %v387_v28, %v889_v10  ;;  %v414_v52 = vadd.f32 %v413_v48, %v412_v45  ;;  %v423_v9 = vadd.f32 %v422_v30, %v421_v42  ;;  %v608_v42 = vld [vmem:[%s997_s5] ss:$0 sm:$0xff]  ;;  %v573_v30 = vlaneseq  ;;  %s791_s5 = smov [#allocation8]  }
 0x1e1   :  { %v396_v53 = vmul.f32 %v388_v49, %v865_v4  ;;  %v402_v54 = vadd.f32 %v401_v50, %v400_v2  ;;  %v428_v44 = vadd.f32 %v427_v55, %v426_v51  ;;  %v411_v13 = vadd.f32 %v410_v58, %v409_v47  ;;  %s588_s18 = sshll.u32 %s791_s5, 4  ;;  %s589_s18 = int_to_ptr.vmem [resolvable:$true] %s588_s18 }
 0x1e2   :  { %v711_v57 = vpop.eup %710  ;;  %v415_v59 = vrot.slane %v414_v52, 2  ;;  %v433_v41 = vsel %vm76_vm0, %v395_v7, 0.0  ;;  %v424_v0 = vrot.slane %v423_v9, 1  ;;  %v574_v49 = vand.u32 127, %v573_v30  ;;  %s756_s6 = scalar_lea.vmem %s589_s18, 16  ;;  %s760_s19 = scalar_lea.vmem %s589_s18, 32 }
 0x1e3   :  { %v389_v60 = vmul.f32 %v711_v57, %v941_v56  ;;  %v403_v61 = vrot.slane %v402_v54, 1  ;;  %v434_v62 = vrot.slane %v433_v41, 4  ;;  %v440_v10 = vsel %vm76_vm0, %v396_v53, 0.0  ;;  %p757_p2 = scmp.ne.s32.totalorder %s589_s18, %s756_s6  ;;  %p761_p3 = scmp.lt.s32.totalorder %s589_s18, %s589_s18 }
 0x1e4   :  { %v416_v63 = vadd.f32 %v415_v59, %v414_v52  ;;  %v429_v4 = vrot.slane %v428_v44, 2  ;;  %v441_v15 = vrot.slane %v440_v10, 4  ;;  %v425_v23 = vadd.f32 %v424_v0, %v423_v9  ;;  %p762_p4 = scmp.lt.s32.totalorder %s760_s19, %s756_s6 }
 0x1e5   :  { %v397_v1 = vmul.f32 %v389_v60, %v869_v6  ;;  %v404_v3 = vadd.f32 %v403_v61, %v402_v54  ;;  %v435_v11 = vadd.f32 %v434_v62, %v433_v41  ;;  %v576_v50 = vshrl.u32 %v573_v30, 7 }
 0x1e6   :  { %v417_v14 = vrot.slane %v416_v63, 1  ;;  %v430_v16 = vadd.f32 %v429_v4, %v428_v44  ;;  %v442_v20 = vadd.f32 %v441_v15, %v440_v10  ;;  %v570_v51 = vstv %s999_s7  ;;  %p763_p5 = por %p762_p4, %p761_p3 }
 0x1e7   :  { %v436_v17 = vrot.slane %v435_v11, 2  ;;  %v447_v56 = vsel %vm76_vm0, %v397_v1, 0.0  ;;  %v472_v6 = vsel %vm471_vm3, %v411_v13, %v404_v3  ;;  %v577_v7 = vsub.s32 %v574_v49, %v576_v50 }
 0x1e8   :  { %v418_v18 = vadd.f32 %v417_v14, %v416_v63  ;;  %v448_v22 = vrot.slane %v447_v56, 4  ;;  %v431_v24 = vrot.slane %v430_v16, 1  ;;  %v443_v26 = vrot.slane %v442_v20, 2  ;;  %p764_p6 = pnand %p763_p5, %p757_p2 }
 0x1e9   :  { %v437_v25 = vadd.f32 %v436_v17, %v435_v11 }
 0x1ea   :  { %v449_v27 = vadd.f32 %v448_v22, %v447_v56  ;;  %v474_v29 = vsel %vm473_vm4, %v418_v18, %v472_v6  ;;  %v432_v31 = vadd.f32 %v431_v24, %v430_v16  ;;  %v444_v33 = vadd.f32 %v443_v26, %v442_v20 }
 0x1eb   :  { %v438_v12 = vrot.slane %v437_v25, 1  ;;  %v476_v32 = vsel %vm475_vm5, %v425_v23, %v474_v29 }
 0x1ec   :  { %v450_v34 = vrot.slane %v449_v27, 2  ;;  %v478_v35 = vsel %vm477_vm6, %v432_v31, %v476_v32  ;;  %v445_v36 = vrot.slane %v444_v33, 1 }
 0x1ed   :  { %v439_v5 = vadd.f32 %v438_v12, %v437_v25 }
 0x1ee   :  { %v451_v19 = vadd.f32 %v450_v34, %v449_v27  ;;  %v446_v37 = vadd.f32 %v445_v36, %v444_v33 }
 0x1ef   :  { %v480_v21 = vsel %vm479_vm7, %v439_v5, %v478_v35 }
 0x1f0   :  { %v452_v38 = vrot.slane %v451_v19, 1  ;;  %v482_v40 = vsel %vm481_vm8, %v446_v37, %v480_v21 }
 0x1f2   :  { %v453_v39 = vadd.f32 %v452_v38, %v451_v19 }
 0x1f4   :  { %v484_v8 = vsel %vm483_vm9, %v453_v39, %v482_v40 }
 0x1f5   :  { %645 = vmatmul.mubr.msk.f32.vlgmr.msra.gmra.mrb[2].mxu1 %vm76_vm0, %v484_v8 }
 0x2c8   :  { %v553_v43 = vpop.f32.mrb[2].mxu1 }
 0x2c9   :  { %v554_v2 = vadd.f32 %v608_v42, %v553_v43  ;;  %v646_v45 = vpop.f32.mrb[3].mxu1 }
 0x2cb   :  { %v557_v28 = vmax.f32 %v554_v2, 0.0 }
 0x2cd   :  { %v565_v47 = vmul.f32 %v610_v46, %v557_v28 }
 0x2cf   :  { %v566_v48 = vsel %vm229_vm1, %v565_v47, 0.0 }
 0x2d0   :  { %567 = vadd.xlane.f32.xlu0 %v566_v48 }
 0x35d   :  { %v568_v52 = vpop.xlane.xlu0 %567 }
 0x35e   :  { %v571_v9 = vadd.f32 %v570_v51, %v568_v52 }
 0x360   :  { %v578_v53 = vrot.slane %v571_v9, %v577_v7 }
 0x362   :  { %581 = vst.msk [vmem:[#allocation8] sm:$0x1] %vm580_vm10, %v578_v53 }
 0x363   :  { %767 = shalt.err (!%p764_p6)
}
 0x364   :  { %s768_s7 = scalar_lea.hbm %s1000_s8, 16 }
 0x365   :  { %p769_p7 = scmp.ne.s32.totalorder %s1000_s8, %s768_s7  ;;  %p772_p8 = scmp.lt.u32.totalorder %s768_s7, %s1000_s8 }
 0x367   :  { %p774_p9 = pnand %p772_p8, %p769_p7 }
 0x369   :  { %777 = shalt.err (!%p774_p9)
}
 0x36a   :  { %591 = dma.vmem_to_hbm [thread:$0]  %s589_s18, 16, %s1000_s8, [#allocation5]  }
 0x36b   :  { %782 = dma.done.wait [#allocation5], 16  }
 0x36c   :  { %783 = vsyncadd [#allocation5], 4294967280 }
 0x36d   :  { %595 = vsyncpa [#allocation4], 1 }
 0x36e   :  { %596 = vsyncpa [#allocation7], 1 }
 0x36f   :  { %597 = vsyncpa [#allocation5], 1 }

</bundles_post_ra>
